<compile_context>
chip_gen: v7x
topology: tpu7x:2x2x1
jax: 0.10.0
libtpu: 0.0.40
codegen_flags: <defaults>
</compile_context>

<pallas_src>
import jax
import jax.numpy as jnp
from jax.experimental import pallas as pl
from jax.experimental.pallas import tpu as pltpu

M_FEAT = 32               # m
N_SEM = 20                # semantic classes
N_NB = 6                  # 6 + 7*min(numCrossScales=0, numScales-1=0)
N_CAT = N_SEM + N_NB      # fused head width = 26
TILE_N = 1024             # points per grid step (lane axis of all tiles)


def _head_kernel(colorsT_ref, w_featT_ref, bn_scale_ref, bn_shift_ref,
                 w_catT_ref, b_cat_ref, outT_ref):
    # colorsT_ref: (3, TILE_N)  -- channel-major, points on lanes (lane-dense).
    # Center tap of SubmanifoldConvolution(3->32, bias=False): feats^T = Wf^T @ X^T
    featsT = jnp.dot(w_featT_ref[...], colorsT_ref[...],
                     preferred_element_type=jnp.float32)          # (32, TILE_N)
    # BatchNormReLU(32) folded into per-channel scale/shift (inference stats).
    featsT = jnp.maximum(featsT * bn_scale_ref[...] + bn_shift_ref[...], 0.0)
    # Fused heads [Linear(32,20) | Linear(32,6)] -> one (26, TILE_N) lane-dense store.
    outT_ref[...] = (jnp.dot(w_catT_ref[...], featsT,
                             preferred_element_type=jnp.float32)
                     + b_cat_ref[...])


def model_head(colors, w_feat, bn_scale, bn_shift, w_lin, b_lin, w_nb, b_nb,
               tile_n=TILE_N):
    """colors: [N, 3] float32. Returns (semantic_pred [N,20], [neighbor_pred [N,6]])."""
    n = colors.shape[0]
    n_pad = tile_n * ((n + tile_n - 1) // tile_n)   # pad to a TILE_N multiple
    grid = (n_pad // tile_n,)

    # Channel-major layout: point axis on lanes -> lane-dense outputs/stores.
    colorsT = jnp.zeros((3, n_pad), jnp.float32).at[:, :n].set(colors.T)
    w_featT = w_feat.T                                        # (32, 3)
    w_catT = jnp.concatenate([w_lin, w_nb], axis=1).T         # (26, 32)
    b_cat = jnp.concatenate([b_lin, b_nb], axis=1).reshape(N_CAT, 1)   # (26, 1)
    bn_scale_c = jnp.reshape(bn_scale, (M_FEAT, 1))           # (32, 1)
    bn_shift_c = jnp.reshape(bn_shift, (M_FEAT, 1))           # (32, 1)

    const = lambda i: (0, 0)   # constant index_map: loaded once, no per-step DMA

    cost = pl.CostEstimate(
        flops=2 * n_pad * (3 * M_FEAT + M_FEAT * N_CAT),
        transcendentals=0,
        bytes_accessed=4 * (n_pad * (3 + N_CAT)
                            + 3 * M_FEAT + N_CAT * M_FEAT + 2 * M_FEAT + N_CAT),
    )

    outT = pl.pallas_call(
        _head_kernel,
        out_shape=jax.ShapeDtypeStruct((N_CAT, n_pad), jnp.float32),
        grid_spec=pltpu.PrefetchScalarGridSpec(
            num_scalar_prefetch=0,
            grid=grid,
            in_specs=[
                pl.BlockSpec((3, tile_n), lambda i: (0, i)),   # colors^T
                pl.BlockSpec((M_FEAT, 3), const),              # w_feat^T
                pl.BlockSpec((M_FEAT, 1), const),              # bn_scale
                pl.BlockSpec((M_FEAT, 1), const),              # bn_shift
                pl.BlockSpec((N_CAT, M_FEAT), const),          # fused head weight^T
                pl.BlockSpec((N_CAT, 1), const),               # fused head bias
            ],
            out_specs=pl.BlockSpec((N_CAT, tile_n), lambda i: (0, i)),
        ),
        compiler_params=pltpu.CompilerParams(
            dimension_semantics=("parallel",)),
        cost_estimate=cost,
    )(colorsT, w_featT, bn_scale_c, bn_shift_c, w_catT, b_cat)

    out = outT.T[:n]                        # back to point-major, drop padding
    semantic_pred = out[:, :N_SEM]
    # forward() slices neighbor output to 6 + min(numCrossScales, numScales-1)*7 = 6
    neighbor_pred = [out[:, N_SEM:N_SEM + N_NB]]
    return semantic_pred, neighbor_pred


if __name__ == "__main__":
    key = jax.random.PRNGKey(0)
    k_coord, k_col, k_feat, k_g, k_b, k_lw, k_lb, k_nw, k_nb = jax.random.split(key, 9)

    N = 1500  # number of points (padding to TILE_N handled inside the wrapper)
    # coords are consumed only by the sparse voxelizer (untranslated); kept for parity.
    coords = jax.random.randint(k_coord, (N, 3), 0, 64, dtype=jnp.int32)
    colors = jax.random.normal(k_col, (N, 3), dtype=jnp.float32)

    # Deterministic parameter init (shapes from __init__; m=32, 20 classes, nb0=6).
    w_feat = jax.random.normal(k_feat, (3, M_FEAT), dtype=jnp.float32) * 0.2
    gamma = 1.0 + 0.01 * jax.random.normal(k_g, (M_FEAT,), dtype=jnp.float32)
    beta = 0.01 * jax.random.normal(k_b, (M_FEAT,), dtype=jnp.float32)
    run_mean = jnp.zeros((M_FEAT,), jnp.float32)
    run_var = jnp.ones((M_FEAT,), jnp.float32)
    eps = 1e-4
    bn_scale = (gamma / jnp.sqrt(run_var + eps)).reshape(1, M_FEAT)
    bn_shift = (beta - run_mean * bn_scale[0]).reshape(1, M_FEAT)

    w_lin = jax.random.normal(k_lw, (M_FEAT, N_SEM), dtype=jnp.float32) * 0.1
    b_lin = jax.random.normal(k_lb, (1, N_SEM), dtype=jnp.float32) * 0.01
    w_nb = jax.random.normal(k_nw, (M_FEAT, N_NB), dtype=jnp.float32) * 0.1
    b_nb = jax.random.normal(k_nb, (1, N_NB), dtype=jnp.float32) * 0.01

    sem, neighbor = model_head(colors, w_feat, bn_scale, bn_shift,
                               w_lin, b_lin, w_nb, b_nb)
    jax.block_until_ready((sem, neighbor))

    # Pure-JAX reference check.
    feats_ref = jnp.maximum(colors @ w_feat * bn_scale + bn_shift, 0.0)
    sem_ref = feats_ref @ w_lin + b_lin
    nb_ref = (feats_ref @ w_nb + b_nb)[:, :N_NB]
    assert sem.shape == (N, 20) and neighbor[0].shape == (N, 6)
    assert jnp.allclose(sem, sem_ref, atol=1e-4), "semantic mismatch"
    assert jnp.allclose(neighbor[0], nb_ref, atol=1e-4), "neighbor mismatch"

    print("KERNEL_OK")
</pallas_src>

<mosaic_0001>
module attributes {stable_mosaic.version = 11 : i64} {
  func.func @_head_kernel(%arg0: i32, %arg1: memref<3x1024xf32, #tpu.memory_space<vmem>>, %arg2: memref<32x3xf32, #tpu.memory_space<vmem>>, %arg3: memref<32x1xf32, #tpu.memory_space<vmem>>, %arg4: memref<32x1xf32, #tpu.memory_space<vmem>>, %arg5: memref<26x32xf32, #tpu.memory_space<vmem>>, %arg6: memref<26x1xf32, #tpu.memory_space<vmem>>, %arg7: memref<26x1024xf32, #tpu.memory_space<vmem>>) attributes {dimension_semantics = [#tpu.dimension_semantics<parallel>], iteration_bounds = array<i64: 2>, scalar_prefetch = 0 : i64, scratch_operands = 0 : i64, tpu.core_type = #tpu.core_type<tc>, window_params = [{transform_indices = @transform_0, window_bounds = array<i64: 3, 1024>}, {pipeline_mode = #tpu.pipeline_mode<synchronous>, transform_indices = @transform_1, window_bounds = array<i64: 32, 3>}, {pipeline_mode = #tpu.pipeline_mode<synchronous>, transform_indices = @transform_2, window_bounds = array<i64: 32, 1>}, {pipeline_mode = #tpu.pipeline_mode<synchronous>, transform_indices = @transform_3, window_bounds = array<i64: 32, 1>}, {pipeline_mode = #tpu.pipeline_mode<synchronous>, transform_indices = @transform_4, window_bounds = array<i64: 26, 32>}, {pipeline_mode = #tpu.pipeline_mode<synchronous>, transform_indices = @transform_5, window_bounds = array<i64: 26, 1>}, {transform_indices = @transform_6, window_bounds = array<i64: 26, 1024>}]} {
    %c0 = arith.constant 0 : index
    %c0_0 = arith.constant 0 : index
    %0 = vector.load %arg2[%c0, %c0_0] : memref<32x3xf32, #tpu.memory_space<vmem>>, vector<32x3xf32>
    %c0_1 = arith.constant 0 : index
    %c0_2 = arith.constant 0 : index
    %1 = vector.load %arg1[%c0_1, %c0_2] : memref<3x1024xf32, #tpu.memory_space<vmem>>, vector<3x1024xf32>
    %cst = arith.constant dense<0.000000e+00> : vector<32x1024xf32>
    %2 = tpu.matmul %0, %1, %cst {dimension_numbers = #tpu.dot_dimension_numbers<[1], [0], [0], [1], [0, 0, 1, 1], [], []>} : vector<32x3xf32>, vector<3x1024xf32>, vector<32x1024xf32> -> vector<32x1024xf32>
    %c0_3 = arith.constant 0 : index
    %c0_4 = arith.constant 0 : index
    %3 = vector.load %arg3[%c0_3, %c0_4] : memref<32x1xf32, #tpu.memory_space<vmem>>, vector<32x1xf32>
    %4 = vector.broadcast %3 : vector<32x1xf32> to vector<32x1024xf32>
    %5 = arith.mulf %2, %4 : vector<32x1024xf32>
    %c0_5 = arith.constant 0 : index
    %c0_6 = arith.constant 0 : index
    %6 = vector.load %arg4[%c0_5, %c0_6] : memref<32x1xf32, #tpu.memory_space<vmem>>, vector<32x1xf32>
    %7 = vector.broadcast %6 : vector<32x1xf32> to vector<32x1024xf32>
    %8 = arith.addf %5, %7 : vector<32x1024xf32>
    %cst_7 = arith.constant 0.000000e+00 : f32
    %9 = vector.broadcast %cst_7 : f32 to vector<32x1024xf32>
    %10 = arith.maximumf %8, %9 : vector<32x1024xf32>
    %c0_8 = arith.constant 0 : index
    %c0_9 = arith.constant 0 : index
    %11 = vector.load %arg5[%c0_8, %c0_9] : memref<26x32xf32, #tpu.memory_space<vmem>>, vector<26x32xf32>
    %cst_10 = arith.constant dense<0.000000e+00> : vector<26x1024xf32>
    %12 = tpu.matmul %11, %10, %cst_10 {dimension_numbers = #tpu.dot_dimension_numbers<[1], [0], [0], [1], [0, 0, 1, 1], [], []>} : vector<26x32xf32>, vector<32x1024xf32>, vector<26x1024xf32> -> vector<26x1024xf32>
    %c0_11 = arith.constant 0 : index
    %c0_12 = arith.constant 0 : index
    %13 = vector.load %arg6[%c0_11, %c0_12] : memref<26x1xf32, #tpu.memory_space<vmem>>, vector<26x1xf32>
    %14 = vector.broadcast %13 : vector<26x1xf32> to vector<26x1024xf32>
    %15 = arith.addf %12, %14 : vector<26x1024xf32>
    %c0_13 = arith.constant 0 : index
    %c0_14 = arith.constant 0 : index
    %16 = vector.load %arg7[%c0_13, %c0_14] : memref<26x1024xf32, #tpu.memory_space<vmem>>, vector<26x1024xf32>
    tpu.vector_store %arg7[%c0_13, %c0_14], %15 {strides = array<i32>} : memref<26x1024xf32, #tpu.memory_space<vmem>>, vector<26x1024xf32>,
    return
  }
  func.func @transform_0(%arg0: i32) -> (i32, i32) {
    %c0_i32 = arith.constant 0 : i32
    %c0_i32_0 = arith.constant 0 : i32
    return %c0_i32, %arg0 : i32, i32
  }
  func.func @transform_1(%arg0: i32) -> (i32, i32) {
    %c0_i32 = arith.constant 0 : i32
    %c0_i32_0 = arith.constant 0 : i32
    %c0_i32_1 = arith.constant 0 : i32
    return %c0_i32, %c0_i32_0 : i32, i32
  }
  func.func @transform_2(%arg0: i32) -> (i32, i32) {
    %c0_i32 = arith.constant 0 : i32
    %c0_i32_0 = arith.constant 0 : i32
    %c0_i32_1 = arith.constant 0 : i32
    return %c0_i32, %c0_i32_0 : i32, i32
  }
  func.func @transform_3(%arg0: i32) -> (i32, i32) {
    %c0_i32 = arith.constant 0 : i32
    %c0_i32_0 = arith.constant 0 : i32
    %c0_i32_1 = arith.constant 0 : i32
    return %c0_i32, %c0_i32_0 : i32, i32
  }
  func.func @transform_4(%arg0: i32) -> (i32, i32) {
    %c0_i32 = arith.constant 0 : i32
    %c0_i32_0 = arith.constant 0 : i32
    %c0_i32_1 = arith.constant 0 : i32
    return %c0_i32, %c0_i32_0 : i32, i32
  }
  func.func @transform_5(%arg0: i32) -> (i32, i32) {
    %c0_i32 = arith.constant 0 : i32
    %c0_i32_0 = arith.constant 0 : i32
    %c0_i32_1 = arith.constant 0 : i32
    return %c0_i32, %c0_i32_0 : i32, i32
  }
  func.func @transform_6(%arg0: i32) -> (i32, i32) {
    %c0_i32 = arith.constant 0 : i32
    %c0_i32_0 = arith.constant 0 : i32
    return %c0_i32, %arg0 : i32, i32
  }
}

</mosaic_0001>

<bundles_post_ra>
// kernel: tpu_custom_call.1
= control target key start
LH: loop header
LB: loop body
LE: loop exit
PB: predicated region body
PF: predicated region fallthrough
CT: control target
= control target key end

     0   :  { %11 = vsyncpa [#allocation3], 0  ;;  %s1923_s0 = inlined_call_operand.vmem [shape: f32[3,2048], index: 0, kind: input, shape index: {}]   ;;  %s1924_s1 = inlined_call_operand.vmem [shape: f32[32,3], index: 1, kind: input, shape index: {}]   ;;  %s1925_s2 = inlined_call_operand.vmem [shape: f32[32,1], index: 2, kind: input, shape index: {}]   ;;  %s1926_s3 = inlined_call_operand.vmem [shape: f32[32,1], index: 3, kind: input, shape index: {}]   ;;  %s1927_s4 = inlined_call_operand.vmem [shape: f32[26,32], index: 4, kind: input, shape index: {}]   ;;  %s1928_s5 = inlined_call_operand.vmem [shape: f32[26,1], index: 5, kind: input, shape index: {}]   ;;  %s1929_s6 = inlined_call_operand.hbm [shape: f32[26,2048], index: 6, kind: output, shape index: {}]  }
   0x1   :  { %13 = vsyncpa [#allocation3 + $0x1], 0  ;;  %s1544_s21 = smov 0   ;;  %s1546_s22 = smov 0  }
   0x2   :  { %s1548_s23 = smov 0   ;;  %s1550_s24 = smov 0  }
   0x3 LB: > { %s1565_s25 = sadd.s32 4294967295, %s1501_s24   ;;  %s1304_s26 = sadd.s32 4294967294, %s1501_s24   ;;  %s1501_s24 = sphi %s1550_s24, %s1935_s24   ;;  %s1497_s23 = sphi %s1548_s23, %s1934_s23   ;;  %s1493_s22 = sphi %s1546_s22, %s1933_s22   ;;  %s1489_s21 = sphi %s1544_s21, %s1932_s21  }
   0x4   : > { %s1569_s27 = sadd.s32 1, %s1501_s24   ;;  %s157_s28 = sadd.s32 1, %s1497_s23 }
   0x5   : > { %s154_s29 = ssub.s32 %s1501_s24, %s1569_s27  ;;  %p167_p0 = scmp.ne.s32.totalorder %s1497_s23, %s1493_s22 }
   0x6   : > { %p155_p1 = scmp.eq.s32.totalorder %s154_s29, 0  ;;  %p168_p2 = scmp.eq.s32.totalorder %s1565_s25, 1 }
   0x7   : > { %p173_p3 = scmp.ne.s32.totalorder %s1493_s22, %s1489_s21  ;;  %p174_p4 = scmp.eq.s32.totalorder %s1304_s26, 1 }
   0x8   : > { %s1580_s30 = scalar_select %p155_p1, %s1497_s23, %s157_s28  }
   0x9   : > { %p1582_p5 = por %p168_p2, %p167_p0  ;;  %p1586_p6 = por %p174_p4, %p173_p3 }
   0xa   : > { %p1307_p7 = scmp.ge.s32.totalorder %s1501_s24, 1  ;;  %p216_p8 = scmp.lt.s32.totalorder %s1501_s24, 3 }
   0xc   : > { %p217_p9 = pnand %p1307_p7, %p216_p8 }
   0xd   : > { %s1309_s9 = sshll.u32 (!%p217_p9), %s1565_s25, 3  ;;  %v1503_v0 = vmov (!%p217_p9), 0.0   ;;  %v655_v1 = vld [vmem:[%s1925_s2] sm:$0xff] (!%p217_p9)  ;;  %v1504_v2 = vmov (!%p217_p9), 0   ;;  %v656_v4 = vld [vmem:[%s1925_s2 + $0x8] sm:$0xff] (!%p217_p9)  ;;  %vm282_vm0 = vcmask (!%p217_p9), 1042432  }
   0xe   : > { %220 = sbr.rel (%p217_p9) target bundleno = 526 (0x20e), region = 44  ;;  %p247_p10 = scmp.lt.s32.totalorder (!%p217_p9), %s1309_s9, 15  ;;  %363 = vmatprep.mubr.f32.mxu0 (!%p217_p9), %v1503_v0  ;;  %452 = vmatprep.mubr.f32.mxu1 (!%p217_p9), %v1503_v0  ;;  %v711_v3 = vld [vmem:[%s1926_s3] sm:$0xff] (!%p217_p9)  ;;  %v712_v5 = vld [vmem:[%s1926_s3 + $0x8] sm:$0xff] (!%p217_p9)  ;;  %vm269_vm1 = vcmask (!%p217_p9), 23552   ;;  %v657_v16 = vld [vmem:[%s1925_s2 + $0x10] sm:$0xff] (!%p217_p9) }
   0xf   : > { %1433 = vset.pattern.permute.xlu0 (!%p217_p9), %v1504_v2  ;;  %1434 = vset.pattern.permute.xlu1 (!%p217_p9), %v1504_v2  ;;  %v253_v12 = vld [vmem:[%s1924_s1] sm:$0xff] (!%p217_p9)  ;;  %v254_v15 = vld [vmem:[%s1924_s1 + $0x8] sm:$0xff] (!%p217_p9)  ;;  %v658_v17 = vld [vmem:[%s1925_s2 + $0x18] sm:$0xff] (!%p217_p9)  ;;  %vm827_vm2 = vcmask (!%p217_p9), 261120   ;;  %s1356_s12 = sshll.u32 (!%p217_p9), %s1565_s25, 10 }
  0x10   : > { %661 = vperm.xlu0 (!%p217_p9), %1433, %v655_v1   ;;  %717 = vperm.xlu1 (!%p217_p9), %1434, %v711_v3   ;;  %v255_v18 = vld [vmem:[%s1924_s1 + $0x10] sm:$0xff] (!%p217_p9)  ;;  %v714_v20 = vld [vmem:[%s1926_s3 + $0x18] sm:$0xff] (!%p217_p9)  ;;  %v803_v22 = vld [vmem:[%s1928_s5] sm:$0xff] (!%p217_p9)  ;;  %s1868_s16 = scalar_lea.hbm (!%p217_p9), %s1929_s6, %s1356_s12 }
  0x11   : > { %v713_v19 = vld [vmem:[%s1926_s3 + $0x10] sm:$0xff] (!%p217_p9)  ;;  %v256_v21 = vld [vmem:[%s1924_s1 + $0x18] sm:$0xff] (!%p217_p9)  ;;  %v804_v23 = vld [vmem:[%s1928_s5 + $0x8] sm:$0xff] (!%p217_p9) }
  0x12   : > { %v805_v24 = vld [vmem:[%s1928_s5 + $0x10] sm:$0xff] (!%p217_p9)  ;;  %v806_v25 = vld [vmem:[%s1928_s5 + $0x18] sm:$0x3] (!%p217_p9) }
  0x14   : > { %666 = vperm.xlu0 (!%p217_p9), %1433, %v656_v4   ;;  %722 = vperm.xlu1 (!%p217_p9), %1434, %v712_v5  }
  0x15   : > { %s1937_s9 = smov (!%p247_p10, %s1309_s9), 15 }
  0x16   : > { %s1310_s18 = sshll.u32 %s1937_s9, 2  ;;  %s243_s9 = sand.u32 1, %s1493_s22  }
  0x17   : > { %s250_s26 = scalar_lea.vmem %s1923_s0, %s1310_s18  ;;  %s1308_s10 = sshll.u32 %s243_s9, 8 }
  0x18   : > { %v257_v6 = vld [vmem:[%s250_s26] sm:$0x77]  ;;  %v258_v7 = vld [vmem:[%s250_s26 + $0x8] sm:$0x77]  ;;  %v259_v8 = vld [vmem:[%s250_s26 + $0x10] sm:$0x77]  ;;  %671 = vperm.xlu0 %1433, %v657_v16   ;;  %676 = vperm.xlu1 %1434, %v658_v17  }
  0x19   : > { %v265_v9 = vcombine.high %v257_v6, %v257_v6  ;;  %v266_v10 = vcombine.high %v258_v7, %v258_v7  ;;  %v260_v11 = vld [vmem:[%s250_s26 + $0x18] sm:$0x77]  ;;  %v267_v13 = vcombine.high %v259_v8, %v259_v8  ;;  %s1819_s11 = scalar_lea.vmem [#allocation2], %s1308_s10  ;;  %s1882_s25 = scalar_lea.sflag [#allocation3], %s243_s9 }
  0x1a   : > { %v268_v14 = vcombine.high %v260_v11, %v260_v11  ;;  %s1242_s13 = sshll.u32 %s1819_s11, 4  ;;  %s1505_s18 = smov [#allocation2]   ;;  %s1872_s13 = int_to_ptr.vmem [resolvable:$true] %s1242_s13 }
  0x1b   : > { %1311 = vmatprep.subr.msk.mxu0 %vm282_vm0, %v265_v9  ;;  %1317 = vmatprep.subr.msk.mxu1 %vm282_vm0, %v266_v10  ;;  %s1439_s17 = scalar_lea.vmem %s1872_s13, 4096  ;;  %s1443_s19 = sshll.u32 %s1505_s18, 4  ;;  %s1444_s19 = int_to_ptr.vmem [resolvable:$false] %s1443_s19 }
  0x1c   : > { %1312 = vmatpush1.msk.msra.mxu0 %vm282_vm0, %v257_v6  ;;  %1318 = vmatpush1.msk.msra.mxu1 %vm282_vm0, %v258_v7  ;;  %p1440_p11 = scmp.ne.s32.totalorder %s1872_s13, %s1439_s17  ;;  %s1445_s20 = scalar_lea.vmem %s1444_s19, 8192 }
  0x1d   : > { %1313 = vmatmul.mubr.msk.f32.vlgmr.msra.gmra.mrb[0].mxu0 %vm269_vm1, %v253_v12  ;;  %1319 = vmatmul.mubr.msk.f32.vlgmr.msra.gmra.mrb[0].mxu1 %vm269_vm1, %v253_v12  ;;  %p1446_p0 = scmp.lt.s32.totalorder %s1872_s13, %s1444_s19  ;;  %p1447_p1 = scmp.lt.s32.totalorder %s1445_s20, %s1439_s17 }
  0x1e   : > { %369 = vmatprep.mubr.f32.mxu0 %v1503_v0  ;;  %458 = vmatprep.mubr.f32.mxu1 %v1503_v0  ;;  %p1441_p12 = pnand %p1440_p11, %p1582_p5 }
  0x1f   : > { %1323 = vmatprep.subr.msk.mxu0 %vm282_vm0, %v267_v13  ;;  %1329 = vmatprep.subr.msk.mxu1 %vm282_vm0, %v268_v14  ;;  %p1448_p2 = por %p1447_p1, %p1446_p0 }
  0x20   : > { %1324 = vmatpush1.msk.msra.mxu0 %vm282_vm0, %v259_v8  ;;  %1330 = vmatpush1.msk.msra.mxu1 %vm282_vm0, %v260_v11  ;;  %p1442_p13 = pneg %p1441_p12 }
  0x21   : > { %1314 = vmatmul.mubr.msk.f32.gmra.mrb[2].mxu0 %vm269_vm1, %v254_v15  ;;  %1320 = vmatmul.mubr.msk.f32.gmra.mrb[2].mxu1 %vm269_vm1, %v254_v15 }
  0x22   : > { %375 = vmatprep.mubr.f32.mxu0 %v1503_v0  ;;  %464 = vmatprep.mubr.f32.mxu1 %v1503_v0  ;;  %p1449_p3 = pnand %p1448_p2, %p1442_p13 }
  0x23   : > { %727 = vperm.xlu0 %1433, %v713_v19   ;;  %732 = vperm.xlu1 %1434, %v714_v20  }
  0x25   : > { %1315 = vmatmul.mubr.msk.f32.gmra.mrb[4].mxu0 %vm269_vm1, %v255_v18  ;;  %1321 = vmatmul.mubr.msk.f32.gmra.mrb[4].mxu1 %vm269_vm1, %v255_v18 }
  0x26   : > { %381 = vmatprep.mubr.f32.mxu0 %v1503_v0  ;;  %470 = vmatprep.mubr.f32.mxu1 %v1503_v0 }
  0x27   : > { %809 = vperm.xlu0 %1433, %v803_v22   ;;  %814 = vperm.xlu1 %1434, %v804_v23  }
  0x29   : > { %1316 = vmatmul.mubr.msk.f32.gmra.mrb[6].mxu0 %vm269_vm1, %v256_v21  ;;  %1322 = vmatmul.mubr.msk.f32.gmra.mrb[6].mxu1 %vm269_vm1, %v256_v21 }
  0x2a   : > { %541 = vmatprep.mubr.f32.mxu0 %v1503_v0  ;;  %630 = vmatprep.mubr.f32.mxu1 %v1503_v0 }
  0x2b   : > { %819 = vperm.xlu0 %1433, %v805_v24   ;;  %824 = vperm.xlu1 %1434, %v806_v25  }
  0x2d   : > { %1325 = vmatmul.mubr.msk.f32.vlgmr.msra.gmra.mrb[8].mxu0 %vm269_vm1, %v253_v12  ;;  %1331 = vmatmul.mubr.msk.f32.vlgmr.msra.gmra.mrb[8].mxu1 %vm269_vm1, %v253_v12 }
  0x2e   : > { %547 = vmatprep.mubr.f32.mxu0 %v1503_v0  ;;  %636 = vmatprep.mubr.f32.mxu1 %v1503_v0 }
  0x31   : > { %1326 = vmatmul.mubr.msk.f32.gmra.mrb[10].mxu0 %vm269_vm1, %v254_v15  ;;  %1332 = vmatmul.mubr.msk.f32.gmra.mrb[10].mxu1 %vm269_vm1, %v254_v15 }
  0x32   : > { %553 = vmatprep.mubr.f32.mxu0 %v1503_v0  ;;  %642 = vmatprep.mubr.f32.mxu1 %v1503_v0 }
  0x35   : > { %1327 = vmatmul.mubr.msk.f32.gmra.mrb[12].mxu0 %vm269_vm1, %v255_v18  ;;  %1333 = vmatmul.mubr.msk.f32.gmra.mrb[12].mxu1 %vm269_vm1, %v255_v18 }
  0x36   : > { %559 = vmatprep.mubr.f32.mxu0 %v1503_v0  ;;  %648 = vmatprep.mubr.f32.mxu1 %v1503_v0 }
  0x39   : > { %1328 = vmatmul.mubr.msk.f32.gmra.mrb[14].mxu0 %vm269_vm1, %v256_v21  ;;  %1334 = vmatmul.mubr.msk.f32.gmra.mrb[14].mxu1 %vm269_vm1, %v256_v21 }
  0x3a   : > { %904 = vmatprep.mubr.f32.mxu0 %v1503_v0  ;;  %993 = vmatprep.mubr.f32.mxu1 %v1503_v0 }
  0x8f   : > { %v1686_v26 = vpop.permute.xlu0 %661  ;;  %v1688_v27 = vpop.permute.xlu1 %717 }
  0x93   : > { %v1690_v28 = vpop.permute.xlu0 %666  ;;  %v1692_v29 = vpop.permute.xlu1 %722 }
  0x97   : > { %v1698_v38 = vpop.permute.xlu0 %671  ;;  %v1708_v51 = vpop.permute.xlu1 %676 }
  0xa2   : > { %v1716_v5 = vpop.permute.xlu0 %727  ;;  %v1726_v24 = vpop.permute.xlu1 %732 }
  0xf0   : > { %v365_v30 = vpop.f32.mrb[0].mxu0  ;;  %v454_v31 = vpop.f32.mrb[0].mxu1 }
  0xf1   : > { %v679_v32 = vmul.f32 %v1686_v26, %v365_v30  ;;  %v681_v33 = vmul.f32 %v1686_v26, %v454_v31  ;;  %v367_v34 = vpop.f32.mrb[1].mxu0  ;;  %v456_v35 = vpop.f32.mrb[1].mxu1 }
  0xf2   : > { %v680_v36 = vmul.f32 %v1686_v26, %v367_v34  ;;  %v682_v37 = vmul.f32 %v1686_v26, %v456_v35 }
  0xf3   : > { %v735_v39 = vadd.f32 %v1688_v27, %v679_v32  ;;  %v737_v40 = vadd.f32 %v1688_v27, %v681_v33 }
  0xf4   : > { %v736_v41 = vadd.f32 %v1688_v27, %v680_v36  ;;  %v738_v42 = vadd.f32 %v1688_v27, %v682_v37  ;;  %v371_v43 = vpop.f32.mrb[2].mxu0  ;;  %v460_v44 = vpop.f32.mrb[2].mxu1 }
  0xf5   : > { %v687_v45 = vmul.f32 %v1690_v28, %v371_v43  ;;  %v689_v46 = vmul.f32 %v1690_v28, %v460_v44  ;;  %v373_v47 = vpop.f32.mrb[3].mxu0  ;;  %v462_v48 = vpop.f32.mrb[3].mxu1  ;;  %v767_v52 = vmax.f32 %v735_v39, 0.0  ;;  %v769_v53 = vmax.f32 %v737_v40, 0.0 }
  0xf6   : > { %v688_v49 = vmul.f32 %v1690_v28, %v373_v47  ;;  %v690_v50 = vmul.f32 %v1690_v28, %v462_v48  ;;  %v768_v56 = vmax.f32 %v736_v41, 0.0  ;;  %v770_v57 = vmax.f32 %v738_v42, 0.0 }
  0xf7   : > { %v743_v54 = vadd.f32 %v1692_v29, %v687_v45  ;;  %v745_v55 = vadd.f32 %v1692_v29, %v689_v46 }
  0xf8   : > { %v744_v58 = vadd.f32 %v1692_v29, %v688_v49  ;;  %v746_v59 = vadd.f32 %v1692_v29, %v690_v50  ;;  %v377_v60 = vpop.f32.mrb[4].mxu0  ;;  %v466_v61 = vpop.f32.mrb[4].mxu1 }
  0xf9   : > { %v775_v62 = vmax.f32 %v743_v54, 0.0  ;;  %v777_v63 = vmax.f32 %v745_v55, 0.0  ;;  %v695_v1 = vmul.f32 %v1698_v38, %v377_v60  ;;  %v697_v2 = vmul.f32 %v1698_v38, %v466_v61  ;;  %v379_v3 = vpop.f32.mrb[5].mxu0  ;;  %v468_v4 = vpop.f32.mrb[5].mxu1 }
  0xfa   : > { %v776_v6 = vmax.f32 %v744_v58, 0.0  ;;  %v778_v7 = vmax.f32 %v746_v59, 0.0  ;;  %v696_v8 = vmul.f32 %v1698_v38, %v379_v3  ;;  %v698_v9 = vmul.f32 %v1698_v38, %v468_v4 }
  0xfb   : > { %v1359_v10 = vpack.c.bf16 %v775_v62, %v767_v52  ;;  %v1367_v11 = vpack.c.bf16 %v777_v63, %v769_v53  ;;  %v751_v12 = vadd.f32 %v1716_v5, %v695_v1  ;;  %v753_v13 = vadd.f32 %v1716_v5, %v697_v2 }
  0xfc   : > { %v752_v14 = vadd.f32 %v1716_v5, %v696_v8  ;;  %v754_v15 = vadd.f32 %v1716_v5, %v698_v9  ;;  %v383_v16 = vpop.f32.mrb[6].mxu0  ;;  %v472_v17 = vpop.f32.mrb[6].mxu1  ;;  %v1357_v18 = vpack.c.bf16 %v776_v6, %v768_v56  ;;  %v1365_v19 = vpack.c.bf16 %v778_v7, %v770_v57  ;;  %v1751_v9 = vld [vmem:[%s1927_s4] sm:$0xff] }
  0xfd   : > { %v703_v20 = vmul.f32 %v1708_v51, %v383_v16  ;;  %v705_v21 = vmul.f32 %v1708_v51, %v472_v17  ;;  %v385_v22 = vpop.f32.mrb[7].mxu0  ;;  %v474_v23 = vpop.f32.mrb[7].mxu1  ;;  %v783_v31 = vmax.f32 %v751_v12, 0.0  ;;  %v785_v32 = vmax.f32 %v753_v13, 0.0 }
  0xfe   : > { %v704_v25 = vmul.f32 %v1708_v51, %v385_v22  ;;  %v706_v30 = vmul.f32 %v1708_v51, %v474_v23  ;;  %1358 = vmatprep.subr.bf16.mxu0 %v1357_v18  ;;  %1366 = vmatprep.subr.bf16.mxu1 %v1365_v19  ;;  %v784_v35 = vmax.f32 %v752_v14, 0.0  ;;  %v786_v36 = vmax.f32 %v754_v15, 0.0 }
  0xff   : > { %v759_v33 = vadd.f32 %v1726_v24, %v703_v20  ;;  %v761_v34 = vadd.f32 %v1726_v24, %v705_v21  ;;  %1360 = vmatpush1.bf16.msra.mxu0 %v1359_v10  ;;  %1368 = vmatpush1.bf16.msra.mxu1 %v1367_v11 }
 0x100   : > { %v760_v37 = vadd.f32 %v1726_v24, %v704_v25  ;;  %v762_v39 = vadd.f32 %v1726_v24, %v706_v30  ;;  %v543_v40 = vpop.f32.mrb[8].mxu0  ;;  %v632_v41 = vpop.f32.mrb[8].mxu1 }
 0x101   : > { %v791_v42 = vmax.f32 %v759_v33, 0.0  ;;  %v793_v43 = vmax.f32 %v761_v34, 0.0  ;;  %v683_v44 = vmul.f32 %v1686_v26, %v543_v40  ;;  %v685_v45 = vmul.f32 %v1686_v26, %v632_v41  ;;  %v545_v46 = vpop.f32.mrb[9].mxu0  ;;  %v634_v47 = vpop.f32.mrb[9].mxu1 }
 0x102   : > { %v792_v48 = vmax.f32 %v760_v37, 0.0  ;;  %v794_v49 = vmax.f32 %v762_v39, 0.0  ;;  %v684_v50 = vmul.f32 %v1686_v26, %v545_v46  ;;  %v686_v52 = vmul.f32 %v1686_v26, %v634_v47 }
 0x103   : > { %v1363_v53 = vpack.c.bf16 %v791_v42, %v783_v31  ;;  %v1371_v54 = vpack.c.bf16 %v793_v43, %v785_v32  ;;  %v739_v55 = vadd.f32 %v1688_v27, %v683_v44  ;;  %v741_v56 = vadd.f32 %v1688_v27, %v685_v45  ;;  %v800_v31 = vld [vmem:[%s1927_s4 + $0x8] sm:$0xff] }
 0x104   : > { %v740_v57 = vadd.f32 %v1688_v27, %v684_v50  ;;  %v742_v58 = vadd.f32 %v1688_v27, %v686_v52  ;;  %v549_v59 = vpop.f32.mrb[10].mxu0  ;;  %v638_v60 = vpop.f32.mrb[10].mxu1  ;;  %v1361_v61 = vpack.c.bf16 %v792_v48, %v784_v35  ;;  %v1369_v62 = vpack.c.bf16 %v794_v49, %v786_v36  ;;  %v801_v48 = vld [vmem:[%s1927_s4 + $0x10] sm:$0xff] }
 0x105   : > { %v691_v63 = vmul.f32 %v1690_v28, %v549_v59  ;;  %v693_v1 = vmul.f32 %v1690_v28, %v638_v60  ;;  %v551_v2 = vpop.f32.mrb[11].mxu0  ;;  %v640_v26 = vpop.f32.mrb[11].mxu1  ;;  %v771_v6 = vmax.f32 %v739_v55, 0.0  ;;  %v773_v7 = vmax.f32 %v741_v56, 0.0  ;;  %v802_v59 = vld [vmem:[%s1927_s4 + $0x18] sm:$0x3] }
 0x106   : > { %v692_v3 = vmul.f32 %v1690_v28, %v551_v2  ;;  %v694_v4 = vmul.f32 %v1690_v28, %v640_v26  ;;  %1362 = vmatprep.subr.bf16.mxu0 %v1361_v61  ;;  %1370 = vmatprep.subr.bf16.mxu1 %v1369_v62  ;;  %v772_v10 = vmax.f32 %v740_v57, 0.0  ;;  %v774_v11 = vmax.f32 %v742_v58, 0.0  ;;  %v810_v62 = vpop.permute.xlu0 %809 }
 0x107   : > { %v747_v27 = vadd.f32 %v1692_v29, %v691_v63  ;;  %v749_v8 = vadd.f32 %v1692_v29, %v693_v1  ;;  %1364 = vmatpush1.bf16.msra.mxu0 %v1363_v53  ;;  %1372 = vmatpush1.bf16.msra.mxu1 %v1371_v54 }
 0x108   : > { %v748_v28 = vadd.f32 %v1692_v29, %v692_v3  ;;  %v750_v12 = vadd.f32 %v1692_v29, %v694_v4  ;;  %v555_v13 = vpop.f32.mrb[12].mxu0  ;;  %v644_v14 = vpop.f32.mrb[12].mxu1 }
 0x109   : > { %v779_v15 = vmax.f32 %v747_v27, 0.0  ;;  %v781_v16 = vmax.f32 %v749_v8, 0.0  ;;  %v699_v17 = vmul.f32 %v1698_v38, %v555_v13  ;;  %v701_v18 = vmul.f32 %v1698_v38, %v644_v14  ;;  %v557_v19 = vpop.f32.mrb[13].mxu0  ;;  %v646_v20 = vpop.f32.mrb[13].mxu1 }
 0x10a   : > { %v780_v21 = vmax.f32 %v748_v28, 0.0  ;;  %v782_v22 = vmax.f32 %v750_v12, 0.0  ;;  %v700_v23 = vmul.f32 %v1698_v38, %v557_v19  ;;  %v702_v25 = vmul.f32 %v1698_v38, %v646_v20  ;;  %1335 = vmatmul.mubr.msk.f32.vlgmr.msra.gmra.mrb[16].mxu0 %vm827_vm2, %v1751_v9  ;;  %1339 = vmatmul.mubr.msk.f32.vlgmr.msra.gmra.mrb[16].mxu1 %vm827_vm2, %v1751_v9  ;;  %v1817_v27 = vpop.permute.xlu1 %814  ;;  %v820_v14 = vpop.permute.xlu0 %819 }
 0x10b   : > { %v1375_v29 = vpack.c.bf16 %v779_v15, %v771_v6  ;;  %v1383_v30 = vpack.c.bf16 %v781_v16, %v773_v7  ;;  %910 = vmatprep.mubr.f32.mxu0 %v1503_v0  ;;  %v755_v32 = vadd.f32 %v1716_v5, %v699_v17  ;;  %999 = vmatprep.mubr.f32.mxu1 %v1503_v0 }
 0x10c   : > { %v561_v33 = vpop.f32.mrb[14].mxu0  ;;  %v650_v34 = vpop.f32.mrb[14].mxu1  ;;  %v1373_v38 = vpack.c.bf16 %v780_v21, %v772_v10  ;;  %v1381_v35 = vpack.c.bf16 %v782_v22, %v774_v11  ;;  %v757_v36 = vadd.f32 %v1716_v5, %v701_v18  ;;  %v756_v37 = vadd.f32 %v1716_v5, %v700_v23 }
 0x10d   : > { %v707_v39 = vmul.f32 %v1708_v51, %v561_v33  ;;  %v709_v40 = vmul.f32 %v1708_v51, %v650_v34  ;;  %v563_v41 = vpop.f32.mrb[15].mxu0  ;;  %v652_v42 = vpop.f32.mrb[15].mxu1  ;;  %v758_v43 = vadd.f32 %v1716_v5, %v702_v25 }
 0x10e   : > { %v708_v44 = vmul.f32 %v1708_v51, %v563_v41  ;;  %v710_v45 = vmul.f32 %v1708_v51, %v652_v42  ;;  %1336 = vmatmul.mubr.msk.f32.gmra.mrb[18].mxu0 %vm827_vm2, %v800_v31  ;;  %1340 = vmatmul.mubr.msk.f32.gmra.mrb[18].mxu1 %vm827_vm2, %v800_v31  ;;  %v787_v51 = vmax.f32 %v755_v32, 0.0  ;;  %v789_v50 = vmax.f32 %v757_v36, 0.0  ;;  %v1833_v23 = vpop.permute.xlu1 %824 }
 0x10f   : > { %v763_v46 = vadd.f32 %v1726_v24, %v707_v39  ;;  %v765_v47 = vadd.f32 %v1726_v24, %v709_v40  ;;  %1374 = vmatprep.subr.bf16.mxu0 %v1373_v38  ;;  %1382 = vmatprep.subr.bf16.mxu1 %v1381_v35  ;;  %v788_v54 = vmax.f32 %v756_v37, 0.0  ;;  %v790_v55 = vmax.f32 %v758_v43, 0.0 }
 0x110   : > { %v764_v5 = vadd.f32 %v1726_v24, %v708_v44  ;;  %v766_v49 = vadd.f32 %v1726_v24, %v710_v45  ;;  %1376 = vmatpush1.bf16.msra.mxu0 %v1375_v29  ;;  %1384 = vmatpush1.bf16.msra.mxu1 %v1383_v30 }
 0x111   : > { %v795_v52 = vmax.f32 %v763_v46, 0.0  ;;  %v797_v53 = vmax.f32 %v765_v47, 0.0  ;;  %916 = vmatprep.mubr.f32.mxu0 %v1503_v0  ;;  %1005 = vmatprep.mubr.f32.mxu1 %v1503_v0 }
 0x112   : > { %v796_v56 = vmax.f32 %v764_v5, 0.0  ;;  %v798_v57 = vmax.f32 %v766_v49, 0.0  ;;  %1337 = vmatmul.mubr.msk.f32.gmra.mrb[20].mxu0 %vm827_vm2, %v801_v48  ;;  %1341 = vmatmul.mubr.msk.f32.gmra.mrb[20].mxu1 %vm827_vm2, %v801_v48 }
 0x113   : > { %v1379_v58 = vpack.c.bf16 %v795_v52, %v787_v51  ;;  %v1387_v24 = vpack.c.bf16 %v797_v53, %v789_v50  ;;  %922 = vmatprep.mubr.f32.mxu0 %v1503_v0  ;;  %1011 = vmatprep.mubr.f32.mxu1 %v1503_v0 }
 0x114   : > { %v1377_v60 = vpack.c.bf16 %v796_v56, %v788_v54  ;;  %v1385_v61 = vpack.c.bf16 %v798_v57, %v790_v55 }
 0x116   : > { %1338 = vmatmul.mubr.msk.f32.gmra.mrb[22].mxu0 %vm827_vm2, %v802_v59  ;;  %1342 = vmatmul.mubr.msk.f32.gmra.mrb[22].mxu1 %vm827_vm2, %v802_v59 }
 0x117   : > { %1378 = vmatprep.subr.bf16.mxu0 %v1377_v60  ;;  %1386 = vmatprep.subr.bf16.mxu1 %v1385_v61 }
 0x118   : > { %1380 = vmatpush1.bf16.msra.mxu0 %v1379_v58  ;;  %1388 = vmatpush1.bf16.msra.mxu1 %v1387_v24 }
 0x119   : > { %1082 = vmatprep.mubr.f32.mxu0 %v1503_v0  ;;  %1171 = vmatprep.mubr.f32.mxu1 %v1503_v0 }
 0x11b   : > { %1343 = vmatmul.mubr.msk.f32.vlgmr.msra.gmra.mrb[24].mxu0 %vm827_vm2, %v1751_v9  ;;  %1347 = vmatmul.mubr.msk.f32.vlgmr.msra.gmra.mrb[24].mxu1 %vm827_vm2, %v1751_v9 }
 0x11c   : > { %1088 = vmatprep.mubr.f32.mxu0 %v1503_v0  ;;  %1177 = vmatprep.mubr.f32.mxu1 %v1503_v0 }
 0x11f   : > { %1344 = vmatmul.mubr.msk.f32.gmra.mrb[26].mxu0 %vm827_vm2, %v800_v31  ;;  %1348 = vmatmul.mubr.msk.f32.gmra.mrb[26].mxu1 %vm827_vm2, %v800_v31 }
 0x120   : > { %1094 = vmatprep.mubr.f32.mxu0 %v1503_v0  ;;  %1183 = vmatprep.mubr.f32.mxu1 %v1503_v0 }
 0x123   : > { %1345 = vmatmul.mubr.msk.f32.gmra.mrb[28].mxu0 %vm827_vm2, %v801_v48  ;;  %1349 = vmatmul.mubr.msk.f32.gmra.mrb[28].mxu1 %vm827_vm2, %v801_v48 }
 0x124   : > { %1100 = vmatprep.mubr.f32.mxu0 %v1503_v0  ;;  %1189 = vmatprep.mubr.f32.mxu1 %v1503_v0 }
 0x127   : > { %1346 = vmatmul.mubr.msk.f32.gmra.mrb[30].mxu0 %vm827_vm2, %v802_v59  ;;  %1350 = vmatmul.mubr.msk.f32.gmra.mrb[30].mxu1 %vm827_vm2, %v802_v59 }
 0x1dd   : > { %v906_v63 = vpop.f32.mrb[16].mxu0  ;;  %v995_v1 = vpop.f32.mrb[16].mxu1 }
 0x1de   : > { %v907_v2 = vadd.f32 %v906_v63, %v810_v62  ;;  %v996_v26 = vadd.f32 %v995_v1, %v810_v62  ;;  %v908_v3 = vpop.f32.mrb[17].mxu0  ;;  %v997_v4 = vpop.f32.mrb[17].mxu1 }
 0x1df   : > { %v909_v6 = vadd.f32 %v908_v3, %v810_v62  ;;  %v998_v7 = vadd.f32 %v997_v4, %v810_v62 }
 0x1e0   : > { %1196 = vst [vmem:[%s1819_s11] sm:$0xff] %v907_v2  ;;  %1198 = vst [vmem:[%s1819_s11 + $0x10] sm:$0xff] %v996_v26 }
 0x1e1   : > { %1197 = vst [vmem:[%s1819_s11 + $0x8] sm:$0xff] %v909_v6  ;;  %1199 = vst [vmem:[%s1819_s11 + $0x18] sm:$0xff] %v998_v7  ;;  %v912_v0 = vpop.f32.mrb[18].mxu0  ;;  %v1001_v8 = vpop.f32.mrb[18].mxu1 }
 0x1e2   : > { %v913_v9 = vadd.f32 %v912_v0, %v1817_v27  ;;  %v1002_v10 = vadd.f32 %v1001_v8, %v1817_v27  ;;  %v914_v11 = vpop.f32.mrb[19].mxu0  ;;  %v1003_v28 = vpop.f32.mrb[19].mxu1 }
 0x1e3   : > { %v915_v12 = vadd.f32 %v914_v11, %v1817_v27  ;;  %v1004_v13 = vadd.f32 %v1003_v28, %v1817_v27 }
 0x1e4   : > { %1204 = vst [vmem:[%s1819_s11 + $0x40] sm:$0xff] %v913_v9  ;;  %1206 = vst [vmem:[%s1819_s11 + $0x50] sm:$0xff] %v1002_v10 }
 0x1e5   : > { %1205 = vst [vmem:[%s1819_s11 + $0x48] sm:$0xff] %v915_v12  ;;  %1207 = vst [vmem:[%s1819_s11 + $0x58] sm:$0xff] %v1004_v13  ;;  %v918_v15 = vpop.f32.mrb[20].mxu0  ;;  %v1007_v16 = vpop.f32.mrb[20].mxu1 }
 0x1e6   : > { %v919_v17 = vadd.f32 %v918_v15, %v820_v14  ;;  %v1008_v18 = vadd.f32 %v1007_v16, %v820_v14  ;;  %v920_v19 = vpop.f32.mrb[21].mxu0  ;;  %v1009_v20 = vpop.f32.mrb[21].mxu1 }
 0x1e7   : > { %v921_v21 = vadd.f32 %v920_v19, %v820_v14  ;;  %v1010_v22 = vadd.f32 %v1009_v20, %v820_v14 }
 0x1e8   : > { %1212 = vst [vmem:[%s1819_s11 + $0x80] sm:$0xff] %v919_v17  ;;  %1214 = vst [vmem:[%s1819_s11 + $0x90] sm:$0xff] %v1008_v18 }
 0x1e9   : > { %1213 = vst [vmem:[%s1819_s11 + $0x88] sm:$0xff] %v921_v21  ;;  %1215 = vst [vmem:[%s1819_s11 + $0x98] sm:$0xff] %v1010_v22  ;;  %v924_v25 = vpop.f32.mrb[22].mxu0  ;;  %v1013_v29 = vpop.f32.mrb[22].mxu1 }
 0x1ea   : > { %v925_v30 = vadd.f32 %v924_v25, %v1833_v23  ;;  %v1014_v31 = vadd.f32 %v1013_v29, %v1833_v23  ;;  %v926_v32 = vpop.f32.mrb[23].mxu0  ;;  %v1015_v33 = vpop.f32.mrb[23].mxu1 }
 0x1eb   : > { %v927_v34 = vadd.f32 %v926_v32, %v1833_v23  ;;  %v1016_v38 = vadd.f32 %v1015_v33, %v1833_v23 }
 0x1ec   : > { %1220 = vst [vmem:[%s1819_s11 + $0xc0] sm:$0x3] %v925_v30  ;;  %1222 = vst [vmem:[%s1819_s11 + $0xd0] sm:$0x3] %v1014_v31 }
 0x1ed   : > { %1221 = vst [vmem:[%s1819_s11 + $0xc8] sm:$0x3] %v927_v34  ;;  %1223 = vst [vmem:[%s1819_s11 + $0xd8] sm:$0x3] %v1016_v38 }
 0x1ee   : > { %v1084_v35 = vpop.f32.mrb[24].mxu0  ;;  %v1173_v36 = vpop.f32.mrb[24].mxu1 }
 0x1ef   : > { %v1085_v37 = vadd.f32 %v1084_v35, %v810_v62  ;;  %v1174_v39 = vadd.f32 %v1173_v36, %v810_v62  ;;  %v1086_v40 = vpop.f32.mrb[25].mxu0  ;;  %v1175_v41 = vpop.f32.mrb[25].mxu1 }
 0x1f0   : > { %v1087_v42 = vadd.f32 %v1086_v40, %v810_v62  ;;  %v1176_v43 = vadd.f32 %v1175_v41, %v810_v62 }
 0x1f1   : > { %1200 = vst [vmem:[%s1819_s11 + $0x20] sm:$0xff] %v1085_v37  ;;  %1202 = vst [vmem:[%s1819_s11 + $0x30] sm:$0xff] %v1174_v39 }
 0x1f2   : > { %1201 = vst [vmem:[%s1819_s11 + $0x28] sm:$0xff] %v1087_v42  ;;  %1203 = vst [vmem:[%s1819_s11 + $0x38] sm:$0xff] %v1176_v43  ;;  %v1090_v44 = vpop.f32.mrb[26].mxu0  ;;  %v1179_v45 = vpop.f32.mrb[26].mxu1 }
 0x1f3   : > { %v1091_v46 = vadd.f32 %v1090_v44, %v1817_v27  ;;  %v1180_v47 = vadd.f32 %v1179_v45, %v1817_v27  ;;  %v1092_v48 = vpop.f32.mrb[27].mxu0  ;;  %v1181_v5 = vpop.f32.mrb[27].mxu1 }
 0x1f4   : > { %v1093_v49 = vadd.f32 %v1092_v48, %v1817_v27  ;;  %v1182_v51 = vadd.f32 %v1181_v5, %v1817_v27 }
 0x1f5   : > { %1208 = vst [vmem:[%s1819_s11 + $0x60] sm:$0xff] %v1091_v46  ;;  %1210 = vst [vmem:[%s1819_s11 + $0x70] sm:$0xff] %v1180_v47 }
 0x1f6   : > { %1209 = vst [vmem:[%s1819_s11 + $0x68] sm:$0xff] %v1093_v49  ;;  %1211 = vst [vmem:[%s1819_s11 + $0x78] sm:$0xff] %v1182_v51  ;;  %v1096_v50 = vpop.f32.mrb[28].mxu0  ;;  %v1185_v52 = vpop.f32.mrb[28].mxu1 }
 0x1f7   : > { %v1097_v53 = vadd.f32 %v1096_v50, %v820_v14  ;;  %v1186_v54 = vadd.f32 %v1185_v52, %v820_v14  ;;  %v1098_v55 = vpop.f32.mrb[29].mxu0  ;;  %v1187_v56 = vpop.f32.mrb[29].mxu1 }
 0x1f8   : > { %v1099_v57 = vadd.f32 %v1098_v55, %v820_v14  ;;  %v1188_v58 = vadd.f32 %v1187_v56, %v820_v14 }
 0x1f9   : > { %1216 = vst [vmem:[%s1819_s11 + $0xa0] sm:$0xff] %v1097_v53  ;;  %1218 = vst [vmem:[%s1819_s11 + $0xb0] sm:$0xff] %v1186_v54 }
 0x1fa   : > { %1217 = vst [vmem:[%s1819_s11 + $0xa8] sm:$0xff] %v1099_v57  ;;  %1219 = vst [vmem:[%s1819_s11 + $0xb8] sm:$0xff] %v1188_v58  ;;  %v1102_v24 = vpop.f32.mrb[30].mxu0  ;;  %v1191_v59 = vpop.f32.mrb[30].mxu1 }
 0x1fb   : > { %v1103_v60 = vadd.f32 %v1102_v24, %v1833_v23  ;;  %v1192_v61 = vadd.f32 %v1191_v59, %v1833_v23  ;;  %v1104_v62 = vpop.f32.mrb[31].mxu0  ;;  %v1193_v63 = vpop.f32.mrb[31].mxu1 }
 0x1fc   : > { %v1105_v1 = vadd.f32 %v1104_v62, %v1833_v23  ;;  %v1194_v2 = vadd.f32 %v1193_v63, %v1833_v23 }
 0x1fd   : > { %1224 = vst [vmem:[%s1819_s11 + $0xe0] sm:$0x3] %v1103_v60  ;;  %1226 = vst [vmem:[%s1819_s11 + $0xf0] sm:$0x3] %v1192_v61 }
 0x1fe   : > { %1225 = vst [vmem:[%s1819_s11 + $0xe8] sm:$0x3] %v1105_v1  ;;  %1227 = vst [vmem:[%s1819_s11 + $0xf8] sm:$0x3] %v1194_v2 }
 0x1ff   : > { %1452 = shalt.err (!%p1449_p3)
}
 0x200   : > { %s1453_s26 = scalar_lea.hbm %s1868_s16, 4096  ;;  %s1457_s9 = scalar_lea.hbm %s1929_s6, 8192 }
 0x201   : > { %p1454_p4 = scmp.ne.s32.totalorder %s1868_s16, %s1453_s26  ;;  %p1458_p9 = scmp.lt.u32.totalorder %s1868_s16, %s1929_s6 }
 0x202   : > { %p1459_p10 = scmp.lt.u32.totalorder %s1457_s9, %s1453_s26  ;;  %p1461_p12 = scmp.lt.u32.totalorder %s1453_s26, %s1868_s16 }
 0x203   : > { %p1455_p7 = pnand %p1454_p4, %p1582_p5 }
 0x204   : > { %p1460_p11 = por %p1459_p10, %p1458_p9 }
 0x205   : > { %p1456_p8 = pneg %p1455_p7 }
 0x206   : > { %p1462_p13 = por %p1461_p12, %p1460_p11 }
 0x208   : > { %p1463_p0 = pnand %p1462_p13, %p1456_p8 }
 0x20a   : > { %1466 = shalt.err (!%p1463_p0)
}
 0x20b   : > { %s1506_s12 = smov 1024   ;;  %s1507_s14 = smov 2048  }
 0x20c   : > { %s1508_s15 = smov 64  }
 0x20d   : > { %1389 = dma.vmem_to_hbm [thread:$0]  (%p1582_p5), %s1872_s13, 4096, %s1868_s16, %s1882_s25, %s1506_s12, %s1507_s14, %s1508_s15  }
 0x20e PF: > { %p1395_p1 = scmp.ge.s32.totalorder %s1501_s24, 2  ;;  %s1257_s17 = sand.u32 1, %s1489_s21  }
 0x20f   : > { %s1258_s18 = scalar_lea.sflag [#allocation3], %s1257_s17 }
 0x210   : > { %p1392_p2 = pnand %p1395_p1, %p1586_p6 }
 0x212   : > { %1484 = dma.done.wait (!%p1392_p2), %s1258_s18, 4096  }
 0x213   : > { %1486 = vsyncadd (!%p1392_p2), %s1258_s18, 4294963200  ;;  %p16_p3 = scmp.ge.s32.totalorder %s1569_s27, 4   ;;  %s1932_s21 = smov %s1493_s22 }
 0x214   : > { %s1933_s22 = smov %s1497_s23  ;;  %s1934_s23 = smov %s1580_s30 }
 0x215   : > { %s1935_s24 = smov %s1569_s27  ;;  %18 = sbr.rel (!%p16_p3) target bundleno = 3 (0x3), region = 79 }
 0x21c   :  { %1263 = vsyncpa [#allocation3], 1 }
 0x21d   :  { %1265 = vsyncpa [#allocation3 + $0x1], 1 }

</bundles_post_ra>
